<compile_context>
chip_gen: v6e
topology: v6e:2x2x1
jax: 0.10.0
libtpu: 0.0.40
codegen_flags: <defaults>
</compile_context>

<pallas_src>
import functools

import jax
import jax.numpy as jnp
from jax import lax
from jax.experimental import pallas as pl
from jax.experimental.pallas import tpu as pltpu


_NEG_INF = -1e30  # finite "minus infinity" keeps exp()/max() NaN-free


def _cdiv(a, b):
    return (a + b - 1) // b


def _round_up(x, m):
    return ((x + m - 1) // m) * m


def _flash_sdpa_kernel(*refs, scale, use_bias, n_kv):
    # Refs (batch dim squeezed by the BlockSpec):
    #   q_ref: (tq, D)  k_ref: (tk, D)  v_ref: (tk, Dv)
    #   [bias_ref: (1, tk)]  o_ref: (tq, Dv)
    #   flash scratch: m (tq,1) l (tq,1) acc (tq,Dv) q_bf16 (tq,D)
    q_ref, k_ref, v_ref = refs[:3]
    bias_ref = refs[3] if use_bias else None
    o_idx = 4 if use_bias else 3
    o_ref = refs[o_idx]

    def scaled_q_bf16():
        q = q_ref[...].astype(jnp.float32)
        if scale is not None:
            q = q * scale
        return q.astype(jnp.bfloat16)

    if n_kv == 1:
        # Single KV tile: plain softmax, no online-softmax carry at all.
        s = lax.dot_general(scaled_q_bf16(), k_ref[...].astype(jnp.bfloat16),
                            (((1,), (1,)), ((), ())),
                            preferred_element_type=jnp.float32)
        if bias_ref is not None:
            s = s + bias_ref[...]           # 0 / -1e30 additive key mask
        m = jnp.max(s, axis=-1, keepdims=True)
        p = jnp.exp(s - m)
        l = jnp.sum(p, axis=-1, keepdims=True)
        ctx = jnp.dot(p.astype(jnp.bfloat16), v_ref[...].astype(jnp.bfloat16),
                      preferred_element_type=jnp.float32)
        o_ref[...] = (ctx * pl.reciprocal(l, approx=True)).astype(o_ref.dtype)
        return

    # Streaming (flash) path over KV tiles.
    m_sc, l_sc, acc_sc, qb_sc = refs[o_idx + 1:]
    ki = pl.program_id(2)

    @pl.when(ki == 0)
    def _():
        m_sc[...] = jnp.full_like(m_sc, _NEG_INF)
        l_sc[...] = jnp.zeros_like(l_sc)
        acc_sc[...] = jnp.zeros_like(acc_sc)
        # Scale + bf16-cast the Q tile once per (b, q-tile); stays resident.
        qb_sc[...] = scaled_q_bf16()

    # Scores (tq, tk): bf16 operands, f32 accumulation on the MXU.
    s = lax.dot_general(qb_sc[...], k_ref[...].astype(jnp.bfloat16),
                        (((1,), (1,)), ((), ())),
                        preferred_element_type=jnp.float32)
    if bias_ref is not None:
        s = s + bias_ref[...]               # broadcast (1, tk) -> (tq, tk)

    # Online softmax update.
    m_prev = m_sc[...]
    m_new = jnp.maximum(m_prev, jnp.max(s, axis=-1, keepdims=True))
    alpha = jnp.exp(m_prev - m_new)
    p = jnp.exp(s - m_new)
    l_sc[...] = alpha * l_sc[...] + jnp.sum(p, axis=-1, keepdims=True)
    acc_sc[...] = alpha * acc_sc[...] + jnp.dot(
        p.astype(jnp.bfloat16), v_ref[...].astype(jnp.bfloat16),
        preferred_element_type=jnp.float32)
    m_sc[...] = m_new

    @pl.when(ki == pl.num_programs(2) - 1)
    def _():
        # Normalize once on the (tq, Dv) context; reciprocal on the EUP.
        o_ref[...] = (acc_sc[...] *
                      pl.reciprocal(l_sc[...], approx=True)).astype(o_ref.dtype)


def scaled_dot_product_attention(Q, K, V, scale=None, *, tq=None, tk=None):
    """Pallas implementation of Scaled_Dot_Product_Attention.forward.

    Q: [B, Lq, D], K: [B, Lk, D], V: [B, Lk, Dv] -> context [B, Lq, Dv].
    Returns only `context`, matching the PyTorch module's return value.
    """
    B, Lq, D = Q.shape
    Bk, Lk, Dk = K.shape
    Bv, Lv, Dv = V.shape
    assert D == Dk and Lk == Lv and B == Bk == Bv

    # Match torch's `if scale:` semantics (0.0 / None -> no scaling).
    if not scale:
        scale = None

    # --- Tile selection -----------------------------------------------------
    if tq is None:
        tq = Lq if Lq <= 512 else 512
        # v7x megacore: make sure the parallel axes expose >= 2 blocks.
        if B * _cdiv(Lq, tq) < 2 and Lq >= 16:
            tq = _round_up(_cdiv(Lq, 2), 8)
    if tk is None:
        # Single KV tile for short sequences (no online-softmax carry),
        # otherwise stream 512-wide KV tiles.
        tk = Lk if Lk <= 1024 else 512

    Lq_pad = _cdiv(Lq, tq) * tq
    Lk_pad = _cdiv(Lk, tk) * tk
    n_kv = Lk_pad // tk
    use_bias = Lk_pad != Lk

    # Pad sequence dims only if the tiling actually requires it; feature
    # dims are never padded (block dim == full array dim is legal).
    Qp = Q if Lq_pad == Lq else jnp.pad(Q, ((0, 0), (0, Lq_pad - Lq), (0, 0)))
    Kp = K if Lk_pad == Lk else jnp.pad(K, ((0, 0), (0, Lk_pad - Lk), (0, 0)))
    Vp = V if Lk_pad == Lk else jnp.pad(V, ((0, 0), (0, Lk_pad - Lk), (0, 0)))

    inputs = [Qp, Kp, Vp]
    in_specs = [
        pl.BlockSpec((None, tq, D), lambda b, qi, ki: (b, qi, 0)),
        pl.BlockSpec((None, tk, D), lambda b, qi, ki: (b, ki, 0)),
        pl.BlockSpec((None, tk, Dv), lambda b, qi, ki: (b, ki, 0)),
    ]
    if use_bias:
        col = lax.broadcasted_iota(jnp.int32, (1, Lk_pad), 1)
        key_bias = jnp.where(col < Lk, 0.0, _NEG_INF).astype(jnp.float32)
        inputs.append(key_bias)
        in_specs.append(pl.BlockSpec((1, tk), lambda b, qi, ki: (0, ki)))

    scratch_shapes = []
    if n_kv > 1:
        scratch_shapes = [
            pltpu.VMEM((tq, 1), jnp.float32),     # running max m
            pltpu.VMEM((tq, 1), jnp.float32),     # running denom l
            pltpu.VMEM((tq, Dv), jnp.float32),    # unnormalized context
            pltpu.VMEM((tq, D), jnp.bfloat16),    # scaled bf16 Q tile
        ]

    kernel = functools.partial(_flash_sdpa_kernel, scale=scale,
                               use_bias=use_bias, n_kv=n_kv)

    out = pl.pallas_call(
        kernel,
        out_shape=jax.ShapeDtypeStruct((B, Lq_pad, Dv), Q.dtype),
        grid_spec=pltpu.PrefetchScalarGridSpec(
            num_scalar_prefetch=0,
            grid=(B, Lq_pad // tq, n_kv),
            in_specs=in_specs,
            out_specs=pl.BlockSpec((None, tq, Dv), lambda b, qi, ki: (b, qi, 0)),
            scratch_shapes=scratch_shapes,
        ),
        compiler_params=pltpu.CompilerParams(
            dimension_semantics=("parallel", "parallel", "arbitrary"),
        ),
    )(*inputs)

    if Lq_pad != Lq:
        out = out[:, :Lq, :]
    return out


def _reference(Q, K, V, scale=None):
    attn = jnp.einsum("bqd,bkd->bqk", Q, K)
    if scale:
        attn = attn * scale
    attn = jax.nn.softmax(attn, axis=-1)
    return jnp.einsum("bqk,bkd->bqd", attn, V)


if __name__ == "__main__":
    key = jax.random.PRNGKey(0)
    kq, kk, kv = jax.random.split(key, 3)

    # 1) Small shapes consistent with the module (single-KV-tile fast path).
    B, Lq, Lk, D = 2, 8, 8, 32
    Q = jax.random.normal(kq, (B, Lq, D), dtype=jnp.float32)
    K = jax.random.normal(kk, (B, Lk, D), dtype=jnp.float32)
    V = jax.random.normal(kv, (B, Lk, D), dtype=jnp.float32)
    scale = 1.0 / (D ** 0.5)

    ctx = scaled_dot_product_attention(Q, K, V, scale=scale)
    jax.block_until_ready(ctx)
    ref = _reference(Q, K, V, scale=scale)
    assert ctx.shape == (B, Lq, D)
    assert jnp.allclose(ctx, ref, atol=2e-2, rtol=2e-2)

    # 2) Non-aligned feature dims, still single KV tile, no padding needed.
    B2, Lq2, Lk2, D2, Dv2 = 2, 136, 260, 48, 40
    k1, k2, k3 = jax.random.split(jax.random.PRNGKey(1), 3)
    Q2 = jax.random.normal(k1, (B2, Lq2, D2), dtype=jnp.float32)
    K2 = jax.random.normal(k2, (B2, Lk2, D2), dtype=jnp.float32)
    V2 = jax.random.normal(k3, (B2, Lk2, Dv2), dtype=jnp.float32)
    s2 = 1.0 / (D2 ** 0.5)
    ctx2 = scaled_dot_product_attention(Q2, K2, V2, scale=s2)
    jax.block_until_ready(ctx2)
    ref2 = _reference(Q2, K2, V2, scale=s2)
    assert ctx2.shape == (B2, Lq2, Dv2)
    assert jnp.allclose(ctx2, ref2, atol=2e-2, rtol=2e-2)

    # 3) Force the streaming flash path (multiple KV tiles + key-mask bias +
    #    query/key seq padding) with explicit small tile overrides.
    ctx3 = scaled_dot_product_attention(Q2, K2, V2, scale=s2, tq=64, tk=128)
    jax.block_until_ready(ctx3)
    assert ctx3.shape == (B2, Lq2, Dv2)
    assert jnp.allclose(ctx3, ref2, atol=2e-2, rtol=2e-2)

    print("KERNEL_OK")
</pallas_src>

<mosaic_0001>
module attributes {stable_mosaic.version = 11 : i64} {
  func.func @_flash_sdpa_kernel(%arg0: i32, %arg1: i32, %arg2: i32, %arg3: memref<1x8x32xf32, #tpu.memory_space<vmem>>, %arg4: memref<1x8x32xf32, #tpu.memory_space<vmem>>, %arg5: memref<1x8x32xf32, #tpu.memory_space<vmem>>, %arg6: memref<1x8x32xf32, #tpu.memory_space<vmem>>) attributes {dimension_semantics = [#tpu.dimension_semantics<parallel>, #tpu.dimension_semantics<parallel>, #tpu.dimension_semantics<arbitrary>], iteration_bounds = array<i64: 2, 1, 1>, scalar_prefetch = 0 : i64, scratch_operands = 0 : i64, tpu.core_type = #tpu.core_type<tc>, window_params = [{transform_indices = @transform_0, window_bounds = array<i64: 1, 8, 32>}, {transform_indices = @transform_1, window_bounds = array<i64: 1, 8, 32>}, {transform_indices = @transform_2, window_bounds = array<i64: 1, 8, 32>}, {transform_indices = @transform_3, window_bounds = array<i64: 1, 8, 32>}]} {
    %c0 = arith.constant 0 : index
    %c0_0 = arith.constant 0 : index
    %c0_1 = arith.constant 0 : index
    %0 = vector.load %arg3[%c0, %c0_0, %c0_1] : memref<1x8x32xf32, #tpu.memory_space<vmem>>, vector<1x8x32xf32>
    %1 = vector.shape_cast %0 : vector<1x8x32xf32> to vector<8x32xf32>
    %cst = arith.constant 0.176776692 : f32
    %2 = vector.broadcast %cst : f32 to vector<8x32xf32>
    %3 = arith.mulf %1, %2 : vector<8x32xf32>
    %4 = arith.truncf %3 : vector<8x32xf32> to vector<8x32xbf16>
    %c0_2 = arith.constant 0 : index
    %c0_3 = arith.constant 0 : index
    %c0_4 = arith.constant 0 : index
    %5 = vector.load %arg4[%c0_2, %c0_3, %c0_4] : memref<1x8x32xf32, #tpu.memory_space<vmem>>, vector<1x8x32xf32>
    %6 = vector.shape_cast %5 : vector<1x8x32xf32> to vector<8x32xf32>
    %7 = arith.truncf %6 : vector<8x32xf32> to vector<8x32xbf16>
    %cst_5 = arith.constant dense<0.000000e+00> : vector<8x8xf32>
    %8 = tpu.matmul %4, %7, %cst_5 {dimension_numbers = #tpu.dot_dimension_numbers<[1], [1], [0], [0], [0, 0, 1, 0], [], []>} : vector<8x32xbf16>, vector<8x32xbf16>, vector<8x8xf32> -> vector<8x8xf32>
    %cst_6 = arith.constant dense<0xFF800000> : vector<8xf32>
    %9 = vector.multi_reduction <maximumf>, %8, %cst_6 [1] : vector<8x8xf32> to vector<8xf32>
    %10 = vector.shape_cast %9 : vector<8xf32> to vector<8x1xf32>
    %11 = vector.broadcast %10 : vector<8x1xf32> to vector<8x8xf32>
    %12 = arith.subf %8, %11 : vector<8x8xf32>
    %13 = math.exp %12 : vector<8x8xf32>
    %cst_7 = arith.constant dense<0.000000e+00> : vector<8xf32>
    %14 = vector.multi_reduction <add>, %13, %cst_7 [1] : vector<8x8xf32> to vector<8xf32>
    %15 = vector.shape_cast %14 : vector<8xf32> to vector<8x1xf32>
    %16 = arith.truncf %13 : vector<8x8xf32> to vector<8x8xbf16>
    %c0_8 = arith.constant 0 : index
    %c0_9 = arith.constant 0 : index
    %c0_10 = arith.constant 0 : index
    %17 = vector.load %arg5[%c0_8, %c0_9, %c0_10] : memref<1x8x32xf32, #tpu.memory_space<vmem>>, vector<1x8x32xf32>
    %18 = vector.shape_cast %17 : vector<1x8x32xf32> to vector<8x32xf32>
    %19 = arith.truncf %18 : vector<8x32xf32> to vector<8x32xbf16>
    %cst_11 = arith.constant dense<0.000000e+00> : vector<8x32xf32>
    %20 = tpu.matmul %16, %19, %cst_11 {dimension_numbers = #tpu.dot_dimension_numbers<[1], [0], [0], [1], [0, 0, 1, 1], [], []>} : vector<8x8xbf16>, vector<8x32xbf16>, vector<8x32xf32> -> vector<8x32xf32>
    %21 = tpu.reciprocal %15 {approx = true} : vector<8x1xf32> -> vector<8x1xf32>
    %22 = vector.broadcast %21 : vector<8x1xf32> to vector<8x32xf32>
    %23 = arith.mulf %20, %22 : vector<8x32xf32>
    %c0_12 = arith.constant 0 : index
    %c0_13 = arith.constant 0 : index
    %c0_14 = arith.constant 0 : index
    %24 = vector.load %arg6[%c0_12, %c0_13, %c0_14] : memref<1x8x32xf32, #tpu.memory_space<vmem>>, vector<1x8x32xf32>
    %25 = vector.shape_cast %24 : vector<1x8x32xf32> to vector<8x32xf32>
    %26 = vector.shape_cast %23 : vector<8x32xf32> to vector<1x8x32xf32>
    tpu.vector_store %arg6[%c0_12, %c0_13, %c0_14], %26 {strides = array<i32>} : memref<1x8x32xf32, #tpu.memory_space<vmem>>, vector<1x8x32xf32>,
    return
  }
  func.func @transform_0(%arg0: i32, %arg1: i32, %arg2: i32) -> (i32, i32, i32) {
    %c0_i32 = arith.constant 0 : i32
    %c0_i32_0 = arith.constant 0 : i32
    return %arg0, %arg1, %c0_i32 : i32, i32, i32
  }
  func.func @transform_1(%arg0: i32, %arg1: i32, %arg2: i32) -> (i32, i32, i32) {
    %c0_i32 = arith.constant 0 : i32
    %c0_i32_0 = arith.constant 0 : i32
    return %arg0, %arg2, %c0_i32 : i32, i32, i32
  }
  func.func @transform_2(%arg0: i32, %arg1: i32, %arg2: i32) -> (i32, i32, i32) {
    %c0_i32 = arith.constant 0 : i32
    %c0_i32_0 = arith.constant 0 : i32
    return %arg0, %arg2, %c0_i32 : i32, i32, i32
  }
  func.func @transform_3(%arg0: i32, %arg1: i32, %arg2: i32) -> (i32, i32, i32) {
    %c0_i32 = arith.constant 0 : i32
    %c0_i32_0 = arith.constant 0 : i32
    return %arg0, %arg1, %c0_i32 : i32, i32, i32
  }
}

</mosaic_0001>

<bundles_post_ra>
// kernel: tpu_custom_call.1
= control target key start
LH: loop header
LB: loop body
LE: loop exit
PB: predicated region body
PF: predicated region fallthrough
CT: control target
= control target key end

     0   :  { %s1070_s0 = inlined_call_operand.hbm [shape: f32[2,8,32], index: 0, kind: input, shape index: {}]   ;;  %s1071_s1 = inlined_call_operand.hbm [shape: f32[2,8,32], index: 1, kind: input, shape index: {}]   ;;  %s1072_s2 = inlined_call_operand.hbm [shape: f32[2,8,32], index: 2, kind: input, shape index: {}]   ;;  %s1073_s3 = inlined_call_operand.hbm [shape: f32[2,8,32], index: 3, kind: output, shape index: {}]  }
   0x1   :  { %1077 = sst [smem:[#allocation14_spill]] %s1071_s1 }
   0x2   :  { %8 = vsyncpa [#allocation3], 0 }
   0x3   :  { %10 = vsyncpa [#allocation3 + $0x1], 0 }
   0x4   :  { %11 = vsyncpa [#allocation6], 0 }
   0x5   :  { %13 = vsyncpa [#allocation6 + $0x1], 0 }
   0x6   :  { %14 = vsyncpa [#allocation4], 0 }
   0x7   :  { %16 = vsyncpa [#allocation4 + $0x1], 0  ;;  %s854_s12 = smov 0   ;;  %s856_s13 = smov 0  }
   0x8   :  { %s858_s14 = smov 0   ;;  %s860_s15 = smov 0  }
   0x9   :  { %s862_s16 = smov 0   ;;  %s864_s17 = smov 0  }
   0xa LB: > { %1078 = sst [smem:[#allocation12_spill]] %s822_s16  ;;  %s885_s18 = sadd.s32 4294967295, %s826_s17   ;;  %s826_s17 = sphi %s864_s17, %s22_s17   ;;  %s822_s16 = sphi %s862_s16, %s1090_s16   ;;  %s818_s15 = sphi %s860_s15, %s1089_s15   ;;  %s814_s14 = sphi %s858_s14, %s1093_s14   ;;  %s810_s13 = sphi %s856_s13, %s1092_s13   ;;  %s806_s12 = sphi %s854_s12, %s1091_s12  }
   0xb   : > { %s544_s19 = sadd.s32 4294967294, %s826_s17   ;;  %s41_s20 = sadd.s32 1, %s822_s16 }
   0xc   : > { %s50_s21 = sadd.s32 1, %s814_s14  ;;  %p43_p0 = scmp.ge.s32.totalorder %s41_s20, 2 }
   0xd   : > { %p57_p1 = scmp.ne.s32.totalorder %s814_s14, %s810_s13  ;;  %p58_p2 = scmp.eq.s32.totalorder %s826_s17, 0 }
   0xe   : > { %p63_p3 = scmp.ne.s32.totalorder %s810_s13, %s806_s12  ;;  %s1095_s20 = smov (%p43_p0, %s41_s20), 0 }
   0xf   : > { %1079 = sst [smem:[#allocation13_spill]] %s1095_s20  ;;  %p897_p4 = por %p58_p2, %p57_p1 }
  0x10   : > { %p64_p5 = scmp.eq.s32.totalorder %s885_s18, 0  ;;  %s45_s23 = ssub.s32 %s822_s16, %s1095_s20 }
  0x11   : > { %p145_p6 = scmp.eq.s32.totalorder %s885_s18, 1  ;;  %p48_p7 = scmp.eq.s32.totalorder %s45_s23, 0 }
  0x12   : > { %p905_p8 = por %p64_p5, %p63_p3  ;;  %p151_p10 = scmp.eq.s32.totalorder %s544_s19, 1 }
  0x13   : > { %p909_p9 = por %p145_p6, %p57_p1  ;;  %p602_p13 = scmp.lt.s32.totalorder %s826_s17, 2 }
  0x14   : > { %s914_s26 = scalar_select %p48_p7, %s814_s14, %s50_s21  }
  0x15   : > { %p916_p11 = por %p151_p10, %p63_p3  ;;  %s1074_s28 = sand.u32 1, %s814_s14  }
  0x16   : > { %s925_s29 = sshll.u32 %s1074_s28, 3  ;;  %s928_s30 = sshll.u32 %s822_s16, 7 }
  0x17   : > { %p932_p0 = pnand %p602_p13, %p897_p4  ;;  %s190_s5 = sand.u32 1, %s826_s17  }
  0x18   : > { %s1085_s1 = sld [smem:[#allocation14_spill]]  ;;  %s194_s9 = scalar_lea.vmem [#allocation5], %s925_s29 }
  0x19   : > { %s202_s10 = sshll.u32 %s194_s9, 4  ;;  %p553_p1 = scmp.ge.s32.totalorder %s826_s17, 1  ;;  %s203_s10 = int_to_ptr.vmem [resolvable:$true] %s202_s10 }
  0x1a   : > { %p226_p2 = scmp.lt.s32.totalorder %s826_s17, 3  ;;  %s944_s11 = scalar_lea.sflag [#allocation6], %s190_s5 }
  0x1b   : > { %p660_p3 = pneg %p932_p0  ;;  %s671_s19 = scalar_lea.vmem %s203_s10, 128 }
  0x1c   : > { %p672_p4 = scmp.ne.s32.totalorder %s203_s10, %s671_s19  ;;  %s828_s21 = smov [#allocation5]  }
  0x1d   : > { %s676_s22 = sshll.u32 %s828_s21, 4  ;;  %s677_s22 = int_to_ptr.vmem [resolvable:$false] %s676_s22 }
  0x1e   : > { %s200_s8 = scalar_lea.hbm %s1085_s1, %s928_s30  ;;  %p674_p5 = pnand %p672_p4, %p660_p3 }
  0x1f   : > { %s678_s23 = scalar_lea.vmem %s677_s22, 256  ;;  %p679_p7 = scmp.lt.s32.totalorder %s203_s10, %s677_s22 }
  0x20   : > { %p675_p6 = pneg %p674_p5  ;;  %p680_p10 = scmp.lt.s32.totalorder %s678_s23, %s671_s19 }
  0x22   : > { %p681_p13 = por %p680_p10, %p679_p7 }
  0x24   : > { %p682_p12 = pnand %p681_p13, %p675_p6 }
  0x26   : > { %685 = shalt.err (!%p682_p12)
}
  0x27   : > { %594 = dma.hbm_to_vmem [thread:$0]  (!%p932_p0), %s200_s8, 128, %s203_s10, %s944_s11  }
  0x28   : > { %p958_p4 = pnand %p553_p1, %p226_p2  ;;  %s181_s9 = scalar_lea.hbm %s1070_s0, %s928_s30 }
  0x29   : > { %s175_s19 = scalar_lea.vmem [#allocation2], %s925_s29  ;;  %s219_s28 = scalar_lea.hbm %s1072_s2, %s928_s30 }
  0x2a   : > { %s183_s21 = sshll.u32 %s175_s19, 4  ;;  %s1087_s1 = sand.u32 1, %s814_s14   ;;  %s184_s21 = int_to_ptr.vmem [resolvable:$true] %s183_s21 }
  0x2b   : > { %s172_s20 = scalar_lea.sflag [#allocation3], %s1087_s1  ;;  %s699_s8 = scalar_lea.vmem %s184_s21, 128 }
  0x2c   : > { %p700_p12 = scmp.ne.s32.totalorder %s184_s21, %s699_s8  ;;  %s829_s10 = smov [#allocation2]  }
  0x2d   : > { %s704_s16 = sshll.u32 %s829_s10, 4  ;;  %s705_s16 = int_to_ptr.vmem [resolvable:$false] %s704_s16 }
  0x2e   : > { %p702_p1 = pnand %p700_p12, %p660_p3  ;;  %s706_s6 = scalar_lea.vmem %s705_s16, 256 }
  0x2f   : > { %p707_p5 = scmp.lt.s32.totalorder %s184_s21, %s705_s16  ;;  %p708_p6 = scmp.lt.s32.totalorder %s706_s6, %s699_s8 }
  0x30   : > { %p703_p2 = pneg %p702_p1 }
  0x31   : > { %p709_p7 = por %p708_p6, %p707_p5 }
  0x33   : > { %p710_p10 = pnand %p709_p7, %p703_p2 }
  0x35   : > { %713 = shalt.err (!%p710_p10)
}
  0x36   : > { %591 = dma.hbm_to_vmem [thread:$0]  (!%p932_p0), %s181_s9, 128, %s184_s21, %s172_s20  }
  0x37   : > { %s213_s1 = scalar_lea.vmem [#allocation7], %s925_s29  ;;  %s830_s22 = smov [#allocation7]  }
  0x38   : > { %s221_s7 = sshll.u32 %s213_s1, 4  ;;  %s732_s16 = sshll.u32 %s830_s22, 4  ;;  %s222_s7 = int_to_ptr.vmem [resolvable:$true] %s221_s7  ;;  %s733_s16 = int_to_ptr.vmem [resolvable:$false] %s732_s16 }
  0x39   : > { %s727_s19 = scalar_lea.vmem %s222_s7, 128  ;;  %s734_s23 = scalar_lea.vmem %s733_s16, 256 }
  0x3a   : > { %p728_p13 = scmp.ne.s32.totalorder %s222_s7, %s727_s19  ;;  %p735_p2 = scmp.lt.s32.totalorder %s222_s7, %s733_s16 }
  0x3b   : > { %p736_p5 = scmp.lt.s32.totalorder %s734_s23, %s727_s19 }
  0x3c   : > { %p730_p12 = pnand %p728_p13, %p660_p3 }
  0x3d   : > { %p737_p6 = por %p736_p5, %p735_p2 }
  0x3e   : > { %p731_p1 = pneg %p730_p12 }
  0x40   : > { %p738_p7 = pnand %p737_p6, %p731_p1 }
  0x42   : > { %741 = shalt.err (!%p738_p7)
}
  0x43   : > { %597 = dma.hbm_to_vmem [thread:$0]  (!%p932_p0), %s219_s28, 128, %s222_s7, %s944_s11  }
  0x44   : > { %230 = sbr.rel (%p958_p4) target bundleno = 649 (0x289), region = 32  ;;  %s993_s9 = sand.u32 (!%p958_p4), 1, %s810_s13  }
  0x45   : > { %s996_s21 = sshll.u32 (!%p958_p4), %s993_s9, 3  ;;  %s233_s4 = scalar_lea.sflag (!%p958_p4), [#allocation3], %s993_s9 }
  0x46   : > { %s236_s8 = scalar_lea.vmem (!%p958_p4), [#allocation2], %s996_s21 }
  0x49   : > { %793 = dma.done.wait (%p905_p8), %s233_s4, 128  }
  0x4a   : > { %795 = vsyncadd (%p905_p8), %s233_s4, 4294967168  ;;  %s241_s28 = sand.u32 1, %s885_s18   ;;  %s245_s11 = scalar_lea.vmem [#allocation5], %s996_s21 }
  0x4b   : > { %s242_s30 = scalar_lea.sflag [#allocation6], %s241_s28 }
  0x4c   : > { %797 = dma.done.wait (%p905_p8), %s242_s30, 256  }
  0x4d   : > { %799 = vsyncadd (%p905_p8), %s242_s30, 4294967040  ;;  %v831_v0 = vmov 0.0   ;;  %vm832_vm0 = vmmov 0   ;;  %v291_v1 = vld [vmem:[%s245_s11] sm:$0xff]  ;;  %vm293_vm1 = vcmask 261120   ;;  %v288_v2 = vld [vmem:[%s236_s8] sm:$0xff] }
  0x4e   : > { %568 = vmatprep.subr.bf16.mxu0 %v831_v0  ;;  %570 = vmatprep.mubr.msk.bf16.mxu0 %vm832_vm0, %v831_v0  ;;  %v292_v3 = vpack.c.bf16 %v291_v1, %v291_v1  ;;  %v289_v5 = vmul.f32 0.17677669, %v288_v2  ;;  %vm340_vm2 = vcmask 64512   ;;  %s254_s18 = scalar_lea.vmem [#allocation7], %s996_s21  ;;  %vm356_vm3 = vcmask 1043456   ;;  %s561_s24 = sshll.u32 %s818_s15, 7 }
  0x4f   : > { %574 = vmatprep.subr.bf16.mxu1 %v831_v0  ;;  %576 = vmatprep.mubr.msk.bf16.mxu1 %vm832_vm0, %v831_v0  ;;  %v351_v12 = vld [vmem:[%s254_s18] sm:$0xff]  ;;  %s286_s5 = scalar_lea.vmem [#allocation8], %s996_s21  ;;  %s1021_s7 = scalar_lea.hbm %s1073_s3, %s561_s24 }
  0x50   : > { %v298_v4 = vsel %vm293_vm1, %v292_v3, 0  ;;  %v290_v6 = vpack.c.bf16 %v289_v5, %v289_v5  ;;  %v352_v13 = vpack.c.bf16 %v351_v12, %v351_v12  ;;  %s418_s10 = sshll.u32 %s286_s5, 4  ;;  %s404_s15 = scalar_lea.sflag [#allocation4], %s993_s9  ;;  %s1023_s10 = int_to_ptr.vmem [resolvable:$true] %s418_s10 }
  0x51   : > { %569 = vmatpush3.bf16.xpose.msra.mxu0 %v298_v4  ;;  %s742_s19 = scalar_lea.vmem %s1023_s10, 128  ;;  %s833_s22 = smov [#allocation8]  }
  0x52   : > { %v358_v14 = vsel %vm356_vm3, %v352_v13, 0  ;;  %p743_p8 = scmp.ne.s32.totalorder %s1023_s10, %s742_s19  ;;  %s746_s16 = sshll.u32 %s833_s22, 4  ;;  %s747_s16 = int_to_ptr.vmem [resolvable:$false] %s746_s16 }
  0x53   : > { %575 = vmatpush3.bf16.msra.mxu1 %v358_v14  ;;  %s748_s23 = scalar_lea.vmem %s747_s16, 256  ;;  %p749_p4 = scmp.lt.s32.totalorder %s1023_s10, %s747_s16 }
  0x54   : > { %p744_p0 = pnand %p743_p8, %p909_p9  ;;  %p750_p10 = scmp.lt.s32.totalorder %s748_s23, %s742_s19 }
  0x56   : > { %p745_p3 = pneg %p744_p0  ;;  %p751_p13 = por %p750_p10, %p749_p4 }
  0x58   : > { %571 = vmatmul.mubr.msk.bf16.vlgmr.msra.gmra.mxu0 %vm293_vm1, %v290_v6  ;;  %p752_p12 = pnand %p751_p13, %p745_p3 }
 0x118   : > { %v334_v7 = vpop.f32.mrf.mxu0 }
 0x119   : > { %v341_v8 = vsel %vm340_vm2, %v334_v7, -inf }
 0x11a   : > { %342 = vmax.xlane.f32.xlu0 %v341_v8  ;;  %v572_v9 = vpop.f32.mrf.mxu0 }
 0x11c   : > { %v337_v10 = vpop.f32.mrf.mxu0 }
 0x11e   : > { %v573_v11 = vpop.f32.mrf.mxu0 }
 0x1a3   : > { %v343_v15 = vpop.xlane.xlu0 %342 }
 0x1a4   : > { %v344_v16 = vsub.f32 %v334_v7, %v343_v15 }
 0x1a6   : > { %v345_v17 = vmul.f32 1.442695, %v344_v16 }
 0x1a8   : > { %654 = vpow2.f32 %v345_v17 }
 0x1b5   : > { %v655_v18 = vpop.eup %654 }
 0x1b6   : > { %v347_v19 = vsel %vm340_vm2, %v655_v18, 0.0  ;;  %v350_v20 = vpack.c.bf16 %v655_v18, %v655_v18 }
 0x1b7   : > { %348 = vadd.xlane.f32.xlu0 %v347_v19 }
 0x1b8   : > { %577 = vmatmul.mubr.msk.bf16.vlgmr.msra.gmra.mxu1 %vm340_vm2, %v350_v20 }
 0x240   : > { %v349_v21 = vpop.xlane.xlu0 %348 }
 0x241   : > { %656 = vrcp.f32 %v349_v21 }
 0x24e   : > { %v657_v22 = vpop.eup %656 }
 0x278   : > { %v394_v23 = vpop.f32.mrf.mxu1 }
 0x279   : > { %v401_v24 = vmul.f32 %v657_v22, %v394_v23 }
 0x27a   : > { %v578_v25 = vpop.f32.mrf.mxu1 }
 0x27b   : > { %402 = vst.msk [vmem:[%s286_s5] sm:$0xff] %vm293_vm1, %v401_v24 }
 0x27c   : > { %v397_v26 = vpop.f32.mrf.mxu1 }
 0x27d   : > { %755 = shalt.err (!%p752_p12)
}
 0x27e   : > { %s756_s20 = scalar_lea.hbm %s1021_s7, 128  ;;  %s760_s21 = scalar_lea.hbm %s1073_s3, 256 }
 0x27f   : > { %p757_p1 = scmp.ne.s32.totalorder %s1021_s7, %s756_s20  ;;  %p761_p6 = scmp.lt.s32.totalorder %s1021_s7, %s1073_s3 }
 0x280   : > { %p762_p7 = scmp.lt.s32.totalorder %s760_s21, %s756_s20 }
 0x281   : > { %p758_p2 = pnand %p757_p1, %p909_p9 }
 0x282   : > { %p763_p8 = por %p762_p7, %p761_p6 }
 0x283   : > { %p759_p5 = pneg %p758_p2 }
 0x285   : > { %p764_p0 = pnand %p763_p8, %p759_p5 }
 0x287   : > { %767 = shalt.err (!%p764_p0)
}
 0x288   : > { %586 = dma.vmem_to_hbm [thread:$0]  (%p909_p9), %s1023_s10, 128, %s1021_s7, %s404_s15   ;;  %v579_v27 = vpop.f32.mrf.mxu1 }
 0x289 PF: > { %s430_s28 = sand.u32 1, %s806_s12   ;;  %p1088_p3 = scmp.ge.s32.totalorder %s826_s17, 2 }
 0x28a   : > { %s431_s30 = scalar_lea.sflag [#allocation4], %s430_s28 }
 0x28b   : > { %p599_p4 = pnand %p1088_p3, %p916_p11 }
 0x28d   : > { %p600_p10 = pneg %p599_p4 }
 0x28f   : > { %801 = dma.done.wait (%p600_p10), %s431_s30, 128  }
 0x290   : > { %803 = vsyncadd (%p600_p10), %s431_s30, 4294967168  ;;  %s22_s17 = sadd.s32 1, %s826_s17   ;;  %s1089_s15 = sld [smem:[#allocation12_spill]] }
 0x291   : > { %p19_p13 = scmp.ge.s32.totalorder %s22_s17, 4   ;;  %s1090_s16 = sld [smem:[#allocation13_spill]] }
 0x292   : > { %s1091_s12 = smov %s810_s13  ;;  %s1092_s13 = smov %s814_s14 }
 0x293   : > { %s1093_s14 = smov %s914_s26  ;;  %21 = sbr.rel (!%p19_p13) target bundleno = 10 (0xa), region = 101 }
 0x298   :  { %436 = vsyncpa [#allocation3], 1 }
 0x299   :  { %438 = vsyncpa [#allocation3 + $0x1], 1 }
 0x29a   :  { %439 = vsyncpa [#allocation6], 1 }
 0x29b   :  { %441 = vsyncpa [#allocation6 + $0x1], 1 }
 0x29c   :  { %442 = vsyncpa [#allocation4], 1 }
 0x29d   :  { %444 = vsyncpa [#allocation4 + $0x1], 1 }

</bundles_post_ra>
